<compile_context>
chip_gen: v7x
topology: tpu7x:2x2x1
jax: 0.10.0
libtpu: 0.0.40
codegen_flags: <defaults>
</compile_context>

<pallas_src>
import numpy as np
import jax
import jax.numpy as jnp
from jax.experimental import pallas as pl
from jax.experimental.pallas import tpu as pltpu

NEG_SLOPE = 0.01  # torch.nn.LeakyReLU default negative slope

# Fixed CNN_ONE geometry: input (1, 114, 80), three 3x3 convs, strides 3/2/2.
_H0, _W0 = 114, 80
# (cin, cout, stride, h_in, w_in, h_out, w_out)
_CONV_CFG = (
    (1, 2, 3, 114, 80, 38, 26),
    (2, 2, 2, 38, 26, 18, 12),
    (2, 2, 2, 18, 12, 8, 5),
)
_C3, _H3, _W3 = 2, 8, 5
_FLAT = _C3 * _H3 * _W3          # 80 (flatten features feeding Linear(80, 27))


def _leaky(v):
    return jnp.where(v >= 0, v, NEG_SLOPE * v)


# ------------------------------ fused kernel ------------------------------ #
def _cnn_one_kernel(
    x_ref,                          # (N*114, 80)  f32     VMEM
    cw1_ref, cb1_ref,               # (240, 52) bf16, (1, 52) f32
    cw2_ref, cb2_ref,               # (156, 24) bf16, (1, 24) f32
    cw3_ref, cb3_ref,               # ( 72, 10) bf16, (1, 10) f32
    rep_ref, mask_ref, sel_ref,     # (10, 80) bf16, (N*8, 80) f32, (N, N*8) bf16
    fw1_ref, fb1_ref,               # (80, 27) bf16, (1, 27) f32
    fw2_ref, fb2_ref,               # (27, nc) bf16, (1, nc) f32
    o_ref,                          # (N, nc)  f32
    s1_ref, s2_ref,                 # VMEM scratch: (N*38, 52), (N*18, 24) f32
):
    n_batch = o_ref.shape[0]

    def gather_lhs(src_ref, rows_per_sample, ho, stride):
        # slab[n*ho + oh, kh*C + c] = src[n*rows_per_sample + oh*stride + kh, c]
        # Strided sublane reads (vld slot) replace the old 0/1 selector dots;
        # lane-concat over kh + sublane-concat over samples builds the single
        # left operand of this layer's matmul for the whole batch.
        blocks = []
        for n in range(n_batch):
            base = n * rows_per_sample
            taps = [src_ref[pl.ds(base + kh, ho, stride=stride), :]
                    for kh in range(3)]
            blocks.append(jnp.concatenate(taps, axis=1))
        return jnp.concatenate(blocks, axis=0).astype(jnp.bfloat16)

    # conv1: (N*38, 240) @ (240, 52)  -> LeakyReLU -> scratch
    lhs1 = gather_lhs(x_ref, _H0, 38, 3)
    y1 = jnp.dot(lhs1, cw1_ref[...], preferred_element_type=jnp.float32)
    s1_ref[...] = _leaky(y1 + cb1_ref[...])

    # conv2: (N*18, 156) @ (156, 24)  -> LeakyReLU -> scratch
    lhs2 = gather_lhs(s1_ref, 38, 18, 2)
    y2 = jnp.dot(lhs2, cw2_ref[...], preferred_element_type=jnp.float32)
    s2_ref[...] = _leaky(y2 + cb2_ref[...])

    # conv3: (N*8, 72) @ (72, 10)  -> LeakyReLU
    lhs3 = gather_lhs(s2_ref, 18, 8, 2)
    y3 = jnp.dot(lhs3, cw3_ref[...], preferred_element_type=jnp.float32)
    y3 = _leaky(y3 + cb3_ref[...])                                  # (N*8, 10)

    # flatten in PyTorch (C, H, W) order for the whole batch:
    #   flat[n, co*40 + oh*5 + ow] = y3[n*8 + oh, co*5 + ow]
    spread = jnp.dot(y3.astype(jnp.bfloat16), rep_ref[...],
                     preferred_element_type=jnp.float32) * mask_ref[...]
    flat = jnp.dot(sel_ref[...], spread.astype(jnp.bfloat16),
                   preferred_element_type=jnp.float32)              # (N, 80)

    # fc: Linear(80, 27) + LeakyReLU + Linear(27, nc); dropout = identity (eval)
    h = _leaky(jnp.dot(flat.astype(jnp.bfloat16), fw1_ref[...],
                       preferred_element_type=jnp.float32) + fb1_ref[...])
    out = jnp.dot(h.astype(jnp.bfloat16), fw2_ref[...],
                  preferred_element_type=jnp.float32) + fb2_ref[...]
    o_ref[...] = out.astype(o_ref.dtype)                            # single store


# ------------------------- parameter preparation --------------------------- #
def _fold_conv_weight(w, stride, w_in, w_out):
    """(cout, cin, 3, 3) torch conv weight -> (3*cin*w_in, cout*w_out) matrix
    with kw taps and the column stride folded in.  Row ordering is
    kh-major / ci / w so it matches the strided-read LHS slab layout."""
    w = np.asarray(w, np.float32)
    cout, cin = w.shape[0], w.shape[1]
    col = np.zeros((3, w_in, w_out), np.float32)
    for kw in range(3):
        for ow in range(w_out):
            col[kw, ow * stride + kw, ow] = 1.0
    cw = np.einsum("oikl,lwv->kiwov", w, col)         # (kh, ci, w, co, ow)
    return cw.reshape(3 * cin * w_in, cout * w_out)


def prepare_params(params):
    """All layout work (weight folding / transposes / selector construction)
    is hoisted here and executed exactly once."""
    prep = {}
    conv_w = (params["w1"], params["w2"], params["w3"])
    conv_b = (params["b1"], params["b2"], params["b3"])
    for i, (cin, cout, s, h_in, w_in, h_out, w_out) in enumerate(_CONV_CFG, 1):
        prep[f"cw{i}"] = jnp.asarray(
            _fold_conv_weight(np.asarray(conv_w[i - 1]), s, w_in, w_out),
            jnp.bfloat16)
        b = np.asarray(conv_b[i - 1], np.float32)
        prep[f"cb{i}"] = jnp.asarray(np.repeat(b, w_out)[None, :], jnp.float32)

    # flatten helpers (exact 0/1 matrices, bf16-representable):
    #   flat[co*40 + oh*5 + ow] = y3[oh, co*5 + ow]
    rep = np.zeros((_C3 * _W3, _FLAT), np.float32)
    mask = np.zeros((_H3, _FLAT), np.float32)
    for co in range(_C3):
        for oh in range(_H3):
            for ow in range(_W3):
                k = co * _H3 * _W3 + oh * _W3 + ow
                rep[co * _W3 + ow, k] = 1.0
                mask[oh, k] = 1.0
    prep["rep"] = jnp.asarray(rep, jnp.bfloat16)
    prep["mask"] = jnp.asarray(mask, jnp.float32)     # tiled per-batch in forward

    # FC weights, pre-transposed (torch stores (out_features, in_features))
    prep["fw1t"] = jnp.asarray(np.asarray(params["fw1"]).T, jnp.bfloat16)  # (80, 27)
    prep["fb1"] = jnp.asarray(np.asarray(params["fb1"])[None, :], jnp.float32)
    prep["fw2t"] = jnp.asarray(np.asarray(params["fw2"]).T, jnp.bfloat16)  # (27, nc)
    prep["fb2"] = jnp.asarray(np.asarray(params["fb2"])[None, :], jnp.float32)
    return prep


# --------------------------------- forward --------------------------------- #
def cnn_one_forward(prep, x):
    n = x.shape[0]
    nc = prep["fw2t"].shape[1]
    x2d = x.reshape(n * _H0, _W0).astype(jnp.float32)   # drop channel, stack rows
    maskb = jnp.tile(prep["mask"], (n, 1))                               # (N*8, 80)
    sel = jnp.asarray(np.kron(np.eye(n, dtype=np.float32),
                              np.ones((1, _H3), np.float32)), jnp.bfloat16)  # (N, N*8)

    vmem = pl.BlockSpec(memory_space=pltpu.MemorySpace.VMEM)
    return pl.pallas_call(
        _cnn_one_kernel,
        out_shape=jax.ShapeDtypeStruct((n, nc), jnp.float32),
        in_specs=[vmem] * 14,
        out_specs=vmem,
        scratch_shapes=[
            pltpu.VMEM((n * 38, 2 * 26), jnp.float32),   # conv1 activations
            pltpu.VMEM((n * 18, 2 * 12), jnp.float32),   # conv2 activations
        ],
    )(x2d,
      prep["cw1"], prep["cb1"],
      prep["cw2"], prep["cb2"],
      prep["cw3"], prep["cb3"],
      prep["rep"], maskb, sel,
      prep["fw1t"], prep["fb1"],
      prep["fw2t"], prep["fb2"])


# ------------------------------- parameters -------------------------------- #
def init_params(key, num_classes=3):
    def uinit(k, shape, fan_in):
        bound = 1.0 / (fan_in ** 0.5)
        return jax.random.uniform(k, shape, jnp.float32, -bound, bound)

    ks = jax.random.split(key, 10)
    p = {}
    # features: Conv2d(1,2,3,s=3), Conv2d(2,2,3,s=2), Conv2d(2,2,3,s=2)
    p["w1"] = uinit(ks[0], (2, 1, 3, 3), 1 * 9)
    p["b1"] = uinit(ks[1], (2,), 1 * 9)
    p["w2"] = uinit(ks[2], (2, 2, 3, 3), 2 * 9)
    p["b2"] = uinit(ks[3], (2,), 2 * 9)
    p["w3"] = uinit(ks[4], (2, 2, 3, 3), 2 * 9)
    p["b3"] = uinit(ks[5], (2,), 2 * 9)
    # fc: Linear(80,27), Linear(27,num_classes)  (torch stores (out_f, in_f))
    p["fw1"] = uinit(ks[6], (27, 80), 80)
    p["fb1"] = uinit(ks[7], (27,), 80)
    p["fw2"] = uinit(ks[8], (num_classes, 27), 27)
    p["fb2"] = uinit(ks[9], (num_classes,), 27)
    return p


if __name__ == "__main__":
    key = jax.random.PRNGKey(0)
    pkey, xkey = jax.random.split(key)
    params = init_params(pkey, num_classes=3)
    prep = prepare_params(params)
    # Input spatial size is dictated by the module (flatten -> 80 features):
    # [N, 1, 114, 80]; small batch of 2.
    x = jax.random.normal(xkey, (2, 1, 114, 80), dtype=jnp.float32)
    out = jax.jit(cnn_one_forward)(prep, x)
    out = jax.block_until_ready(out)
    assert out.shape == (2, 3), out.shape
    print("KERNEL_OK")
</pallas_src>

<mosaic_0001>
module attributes {stable_mosaic.version = 11 : i64} {
  func.func @_cnn_one_kernel(%arg0: memref<228x80xf32, #tpu.memory_space<vmem>>, %arg1: memref<240x52xbf16, #tpu.memory_space<vmem>>, %arg2: memref<1x52xf32, #tpu.memory_space<vmem>>, %arg3: memref<156x24xbf16, #tpu.memory_space<vmem>>, %arg4: memref<1x24xf32, #tpu.memory_space<vmem>>, %arg5: memref<72x10xbf16, #tpu.memory_space<vmem>>, %arg6: memref<1x10xf32, #tpu.memory_space<vmem>>, %arg7: memref<10x80xbf16, #tpu.memory_space<vmem>>, %arg8: memref<16x80xf32, #tpu.memory_space<vmem>>, %arg9: memref<2x16xbf16, #tpu.memory_space<vmem>>, %arg10: memref<80x27xbf16, #tpu.memory_space<vmem>>, %arg11: memref<1x27xf32, #tpu.memory_space<vmem>>, %arg12: memref<27x3xbf16, #tpu.memory_space<vmem>>, %arg13: memref<1x3xf32, #tpu.memory_space<vmem>>, %arg14: memref<2x3xf32, #tpu.memory_space<vmem>>, %arg15: memref<76x52xf32, #tpu.memory_space<vmem>>, %arg16: memref<36x24xf32, #tpu.memory_space<vmem>>) attributes {dimension_semantics = [], scalar_prefetch = 0 : i64, scratch_operands = 2 : i64, tpu.core_type = #tpu.core_type<tc>} {
    %c0 = arith.constant 0 : index
    %c0_0 = arith.constant 0 : index
    %0 = tpu.strided_load %arg0[%c0, %c0_0] {strides = array<i32: 3, 1>} : memref<228x80xf32, #tpu.memory_space<vmem>>, vector<38x80xf32>
    %c1 = arith.constant 1 : index
    %c0_1 = arith.constant 0 : index
    %1 = tpu.strided_load %arg0[%c1, %c0_1] {strides = array<i32: 3, 1>} : memref<228x80xf32, #tpu.memory_space<vmem>>, vector<38x80xf32>
    %c2 = arith.constant 2 : index
    %c0_2 = arith.constant 0 : index
    %2 = tpu.strided_load %arg0[%c2, %c0_2] {strides = array<i32: 3, 1>} : memref<228x80xf32, #tpu.memory_space<vmem>>, vector<38x80xf32>
    %3 = tpu.concatenate %0, %1, %2 in 1 : vector<38x80xf32>, vector<38x80xf32>, vector<38x80xf32> -> vector<38x240xf32>
    %c114 = arith.constant 114 : index
    %c0_3 = arith.constant 0 : index
    %4 = tpu.strided_load %arg0[%c114, %c0_3] {strides = array<i32: 3, 1>} : memref<228x80xf32, #tpu.memory_space<vmem>>, vector<38x80xf32>
    %c115 = arith.constant 115 : index
    %c0_4 = arith.constant 0 : index
    %5 = tpu.strided_load %arg0[%c115, %c0_4] {strides = array<i32: 3, 1>} : memref<228x80xf32, #tpu.memory_space<vmem>>, vector<38x80xf32>
    %c116 = arith.constant 116 : index
    %c0_5 = arith.constant 0 : index
    %6 = tpu.strided_load %arg0[%c116, %c0_5] {strides = array<i32: 3, 1>} : memref<228x80xf32, #tpu.memory_space<vmem>>, vector<38x80xf32>
    %7 = tpu.concatenate %4, %5, %6 in 1 : vector<38x80xf32>, vector<38x80xf32>, vector<38x80xf32> -> vector<38x240xf32>
    %8 = tpu.concatenate %3, %7 in 0 : vector<38x240xf32>, vector<38x240xf32> -> vector<76x240xf32>
    %9 = arith.truncf %8 : vector<76x240xf32> to vector<76x240xbf16>
    %c0_6 = arith.constant 0 : index
    %c0_7 = arith.constant 0 : index
    %10 = vector.load %arg1[%c0_6, %c0_7] : memref<240x52xbf16, #tpu.memory_space<vmem>>, vector<240x52xbf16>
    %cst = arith.constant dense<0.000000e+00> : vector<76x52xf32>
    %11 = tpu.matmul %9, %10, %cst {dimension_numbers = #tpu.dot_dimension_numbers<[1], [0], [0], [1], [0, 0, 1, 1], [], []>} : vector<76x240xbf16>, vector<240x52xbf16>, vector<76x52xf32> -> vector<76x52xf32>
    %c0_8 = arith.constant 0 : index
    %c0_9 = arith.constant 0 : index
    %12 = vector.load %arg2[%c0_8, %c0_9] : memref<1x52xf32, #tpu.memory_space<vmem>>, vector<1x52xf32>
    %13 = vector.broadcast %12 : vector<1x52xf32> to vector<76x52xf32>
    %14 = arith.addf %11, %13 : vector<76x52xf32>
    %cst_10 = arith.constant 0.000000e+00 : f32
    %15 = vector.broadcast %cst_10 : f32 to vector<76x52xf32>
    %16 = arith.cmpf oge, %14, %15 : vector<76x52xf32>
    %cst_11 = arith.constant 0.00999999977 : f32
    %17 = vector.broadcast %cst_11 : f32 to vector<76x52xf32>
    %18 = arith.mulf %17, %14 : vector<76x52xf32>
    %19 = arith.select %16, %14, %18 : vector<76x52xi1>, vector<76x52xf32>
    %c0_12 = arith.constant 0 : index
    %c0_13 = arith.constant 0 : index
    %20 = vector.load %arg15[%c0_12, %c0_13] : memref<76x52xf32, #tpu.memory_space<vmem>>, vector<76x52xf32>
    tpu.vector_store %arg15[%c0_12, %c0_13], %19 {strides = array<i32>} : memref<76x52xf32, #tpu.memory_space<vmem>>, vector<76x52xf32>,
    %c0_14 = arith.constant 0 : index
    %c0_15 = arith.constant 0 : index
    %21 = tpu.strided_load %arg15[%c0_14, %c0_15] {strides = array<i32: 2, 1>} : memref<76x52xf32, #tpu.memory_space<vmem>>, vector<18x52xf32>
    %c1_16 = arith.constant 1 : index
    %c0_17 = arith.constant 0 : index
    %22 = tpu.strided_load %arg15[%c1_16, %c0_17] {strides = array<i32: 2, 1>} : memref<76x52xf32, #tpu.memory_space<vmem>>, vector<18x52xf32>
    %c2_18 = arith.constant 2 : index
    %c0_19 = arith.constant 0 : index
    %23 = tpu.strided_load %arg15[%c2_18, %c0_19] {strides = array<i32: 2, 1>} : memref<76x52xf32, #tpu.memory_space<vmem>>, vector<18x52xf32>
    %24 = tpu.concatenate %21, %22, %23 in 1 : vector<18x52xf32>, vector<18x52xf32>, vector<18x52xf32> -> vector<18x156xf32>
    %c38 = arith.constant 38 : index
    %c0_20 = arith.constant 0 : index
    %25 = tpu.strided_load %arg15[%c38, %c0_20] {strides = array<i32: 2, 1>} : memref<76x52xf32, #tpu.memory_space<vmem>>, vector<18x52xf32>
    %c39 = arith.constant 39 : index
    %c0_21 = arith.constant 0 : index
    %26 = tpu.strided_load %arg15[%c39, %c0_21] {strides = array<i32: 2, 1>} : memref<76x52xf32, #tpu.memory_space<vmem>>, vector<18x52xf32>
    %c40 = arith.constant 40 : index
    %c0_22 = arith.constant 0 : index
    %27 = tpu.strided_load %arg15[%c40, %c0_22] {strides = array<i32: 2, 1>} : memref<76x52xf32, #tpu.memory_space<vmem>>, vector<18x52xf32>
    %28 = tpu.concatenate %25, %26, %27 in 1 : vector<18x52xf32>, vector<18x52xf32>, vector<18x52xf32> -> vector<18x156xf32>
    %29 = tpu.concatenate %24, %28 in 0 : vector<18x156xf32>, vector<18x156xf32> -> vector<36x156xf32>
    %30 = arith.truncf %29 : vector<36x156xf32> to vector<36x156xbf16>
    %c0_23 = arith.constant 0 : index
    %c0_24 = arith.constant 0 : index
    %31 = vector.load %arg3[%c0_23, %c0_24] : memref<156x24xbf16, #tpu.memory_space<vmem>>, vector<156x24xbf16>
    %cst_25 = arith.constant dense<0.000000e+00> : vector<36x24xf32>
    %32 = tpu.matmul %30, %31, %cst_25 {dimension_numbers = #tpu.dot_dimension_numbers<[1], [0], [0], [1], [0, 0, 1, 1], [], []>} : vector<36x156xbf16>, vector<156x24xbf16>, vector<36x24xf32> -> vector<36x24xf32>
    %c0_26 = arith.constant 0 : index
    %c0_27 = arith.constant 0 : index
    %33 = vector.load %arg4[%c0_26, %c0_27] : memref<1x24xf32, #tpu.memory_space<vmem>>, vector<1x24xf32>
    %34 = vector.broadcast %33 : vector<1x24xf32> to vector<36x24xf32>
    %35 = arith.addf %32, %34 : vector<36x24xf32>
    %cst_28 = arith.constant 0.000000e+00 : f32
    %36 = vector.broadcast %cst_28 : f32 to vector<36x24xf32>
    %37 = arith.cmpf oge, %35, %36 : vector<36x24xf32>
    %cst_29 = arith.constant 0.00999999977 : f32
    %38 = vector.broadcast %cst_29 : f32 to vector<36x24xf32>
    %39 = arith.mulf %38, %35 : vector<36x24xf32>
    %40 = arith.select %37, %35, %39 : vector<36x24xi1>, vector<36x24xf32>
    %c0_30 = arith.constant 0 : index
    %c0_31 = arith.constant 0 : index
    %41 = vector.load %arg16[%c0_30, %c0_31] : memref<36x24xf32, #tpu.memory_space<vmem>>, vector<36x24xf32>
    tpu.vector_store %arg16[%c0_30, %c0_31], %40 {strides = array<i32>} : memref<36x24xf32, #tpu.memory_space<vmem>>, vector<36x24xf32>,
    %c0_32 = arith.constant 0 : index
    %c0_33 = arith.constant 0 : index
    %42 = tpu.strided_load %arg16[%c0_32, %c0_33] {strides = array<i32: 2, 1>} : memref<36x24xf32, #tpu.memory_space<vmem>>, vector<8x24xf32>
    %c1_34 = arith.constant 1 : index
    %c0_35 = arith.constant 0 : index
    %43 = tpu.strided_load %arg16[%c1_34, %c0_35] {strides = array<i32: 2, 1>} : memref<36x24xf32, #tpu.memory_space<vmem>>, vector<8x24xf32>
    %c2_36 = arith.constant 2 : index
    %c0_37 = arith.constant 0 : index
    %44 = tpu.strided_load %arg16[%c2_36, %c0_37] {strides = array<i32: 2, 1>} : memref<36x24xf32, #tpu.memory_space<vmem>>, vector<8x24xf32>
    %45 = tpu.concatenate %42, %43, %44 in 1 : vector<8x24xf32>, vector<8x24xf32>, vector<8x24xf32> -> vector<8x72xf32>
    %c18 = arith.constant 18 : index
    %c0_38 = arith.constant 0 : index
    %46 = tpu.strided_load %arg16[%c18, %c0_38] {strides = array<i32: 2, 1>} : memref<36x24xf32, #tpu.memory_space<vmem>>, vector<8x24xf32>
    %c19 = arith.constant 19 : index
    %c0_39 = arith.constant 0 : index
    %47 = tpu.strided_load %arg16[%c19, %c0_39] {strides = array<i32: 2, 1>} : memref<36x24xf32, #tpu.memory_space<vmem>>, vector<8x24xf32>
    %c20 = arith.constant 20 : index
    %c0_40 = arith.constant 0 : index
    %48 = tpu.strided_load %arg16[%c20, %c0_40] {strides = array<i32: 2, 1>} : memref<36x24xf32, #tpu.memory_space<vmem>>, vector<8x24xf32>
    %49 = tpu.concatenate %46, %47, %48 in 1 : vector<8x24xf32>, vector<8x24xf32>, vector<8x24xf32> -> vector<8x72xf32>
    %50 = tpu.concatenate %45, %49 in 0 : vector<8x72xf32>, vector<8x72xf32> -> vector<16x72xf32>
    %51 = arith.truncf %50 : vector<16x72xf32> to vector<16x72xbf16>
    %c0_41 = arith.constant 0 : index
    %c0_42 = arith.constant 0 : index
    %52 = vector.load %arg5[%c0_41, %c0_42] : memref<72x10xbf16, #tpu.memory_space<vmem>>, vector<72x10xbf16>
    %cst_43 = arith.constant dense<0.000000e+00> : vector<16x10xf32>
    %53 = tpu.matmul %51, %52, %cst_43 {dimension_numbers = #tpu.dot_dimension_numbers<[1], [0], [0], [1], [0, 0, 1, 1], [], []>} : vector<16x72xbf16>, vector<72x10xbf16>, vector<16x10xf32> -> vector<16x10xf32>
    %c0_44 = arith.constant 0 : index
    %c0_45 = arith.constant 0 : index
    %54 = vector.load %arg6[%c0_44, %c0_45] : memref<1x10xf32, #tpu.memory_space<vmem>>, vector<1x10xf32>
    %55 = vector.broadcast %54 : vector<1x10xf32> to vector<16x10xf32>
    %56 = arith.addf %53, %55 : vector<16x10xf32>
    %cst_46 = arith.constant 0.000000e+00 : f32
    %57 = vector.broadcast %cst_46 : f32 to vector<16x10xf32>
    %58 = arith.cmpf oge, %56, %57 : vector<16x10xf32>
    %cst_47 = arith.constant 0.00999999977 : f32
    %59 = vector.broadcast %cst_47 : f32 to vector<16x10xf32>
    %60 = arith.mulf %59, %56 : vector<16x10xf32>
    %61 = arith.select %58, %56, %60 : vector<16x10xi1>, vector<16x10xf32>
    %62 = arith.truncf %61 : vector<16x10xf32> to vector<16x10xbf16>
    %c0_48 = arith.constant 0 : index
    %c0_49 = arith.constant 0 : index
    %63 = vector.load %arg7[%c0_48, %c0_49] : memref<10x80xbf16, #tpu.memory_space<vmem>>, vector<10x80xbf16>
    %cst_50 = arith.constant dense<0.000000e+00> : vector<16x80xf32>
    %64 = tpu.matmul %62, %63, %cst_50 {dimension_numbers = #tpu.dot_dimension_numbers<[1], [0], [0], [1], [0, 0, 1, 1], [], []>} : vector<16x10xbf16>, vector<10x80xbf16>, vector<16x80xf32> -> vector<16x80xf32>
    %c0_51 = arith.constant 0 : index
    %c0_52 = arith.constant 0 : index
    %65 = vector.load %arg8[%c0_51, %c0_52] : memref<16x80xf32, #tpu.memory_space<vmem>>, vector<16x80xf32>
    %66 = arith.mulf %64, %65 : vector<16x80xf32>
    %c0_53 = arith.constant 0 : index
    %c0_54 = arith.constant 0 : index
    %67 = vector.load %arg9[%c0_53, %c0_54] : memref<2x16xbf16, #tpu.memory_space<vmem>>, vector<2x16xbf16>
    %68 = arith.truncf %66 : vector<16x80xf32> to vector<16x80xbf16>
    %cst_55 = arith.constant dense<0.000000e+00> : vector<2x80xf32>
    %69 = tpu.matmul %67, %68, %cst_55 {dimension_numbers = #tpu.dot_dimension_numbers<[1], [0], [0], [1], [0, 0, 1, 1], [], []>} : vector<2x16xbf16>, vector<16x80xbf16>, vector<2x80xf32> -> vector<2x80xf32>
    %70 = arith.truncf %69 : vector<2x80xf32> to vector<2x80xbf16>
    %c0_56 = arith.constant 0 : index
    %c0_57 = arith.constant 0 : index
    %71 = vector.load %arg10[%c0_56, %c0_57] : memref<80x27xbf16, #tpu.memory_space<vmem>>, vector<80x27xbf16>
    %cst_58 = arith.constant dense<0.000000e+00> : vector<2x27xf32>
    %72 = tpu.matmul %70, %71, %cst_58 {dimension_numbers = #tpu.dot_dimension_numbers<[1], [0], [0], [1], [0, 0, 1, 1], [], []>} : vector<2x80xbf16>, vector<80x27xbf16>, vector<2x27xf32> -> vector<2x27xf32>
    %c0_59 = arith.constant 0 : index
    %c0_60 = arith.constant 0 : index
    %73 = vector.load %arg11[%c0_59, %c0_60] : memref<1x27xf32, #tpu.memory_space<vmem>>, vector<1x27xf32>
    %74 = vector.broadcast %73 : vector<1x27xf32> to vector<2x27xf32>
    %75 = arith.addf %72, %74 : vector<2x27xf32>
    %cst_61 = arith.constant 0.000000e+00 : f32
    %76 = vector.broadcast %cst_61 : f32 to vector<2x27xf32>
    %77 = arith.cmpf oge, %75, %76 : vector<2x27xf32>
    %cst_62 = arith.constant 0.00999999977 : f32
    %78 = vector.broadcast %cst_62 : f32 to vector<2x27xf32>
    %79 = arith.mulf %78, %75 : vector<2x27xf32>
    %80 = arith.select %77, %75, %79 : vector<2x27xi1>, vector<2x27xf32>
    %81 = arith.truncf %80 : vector<2x27xf32> to vector<2x27xbf16>
    %c0_63 = arith.constant 0 : index
    %c0_64 = arith.constant 0 : index
    %82 = vector.load %arg12[%c0_63, %c0_64] : memref<27x3xbf16, #tpu.memory_space<vmem>>, vector<27x3xbf16>
    %cst_65 = arith.constant dense<0.000000e+00> : vector<2x3xf32>
    %83 = tpu.matmul %81, %82, %cst_65 {dimension_numbers = #tpu.dot_dimension_numbers<[1], [0], [0], [1], [0, 0, 1, 1], [], []>} : vector<2x27xbf16>, vector<27x3xbf16>, vector<2x3xf32> -> vector<2x3xf32>
    %c0_66 = arith.constant 0 : index
    %c0_67 = arith.constant 0 : index
    %84 = vector.load %arg13[%c0_66, %c0_67] : memref<1x3xf32, #tpu.memory_space<vmem>>, vector<1x3xf32>
    %85 = vector.broadcast %84 : vector<1x3xf32> to vector<2x3xf32>
    %86 = arith.addf %83, %85 : vector<2x3xf32>
    %c0_68 = arith.constant 0 : index
    %c0_69 = arith.constant 0 : index
    %87 = vector.load %arg14[%c0_68, %c0_69] : memref<2x3xf32, #tpu.memory_space<vmem>>, vector<2x3xf32>
    tpu.vector_store %arg14[%c0_68, %c0_69], %86 {strides = array<i32>} : memref<2x3xf32, #tpu.memory_space<vmem>>, vector<2x3xf32>,
    return
  }
}

</mosaic_0001>

<bundles_post_ra>
// kernel: cnn_one_forward.1
= control target key start
LH: loop header
LB: loop body
LE: loop exit
PB: predicated region body
PF: predicated region fallthrough
CT: control target
= control target key end

     0   :  { %s1537_s29 = smov 80   ;;  %v1538_v16 = vmov 0   ;;  %s1539_s24 = smov 32   ;;  %s2016_s0 = inlined_call_operand.vmem [shape: f32[228,80], index: 0, kind: input, shape index: {}]   ;;  %s2017_s1 = inlined_call_operand.vmem [shape: bf16[240,52], index: 1, kind: input, shape index: {}]   ;;  %s2018_s2 = inlined_call_operand.vmem [shape: f32[1,52], index: 2, kind: input, shape index: {}]   ;;  %s2019_s3 = inlined_call_operand.vmem [shape: bf16[156,24], index: 3, kind: input, shape index: {}]   ;;  %s2020_s4 = inlined_call_operand.vmem [shape: f32[1,24], index: 4, kind: input, shape index: {}]   ;;  %s2021_s5 = inlined_call_operand.vmem [shape: bf16[72,10], index: 5, kind: input, shape index: {}]   ;;  %s2022_s6 = inlined_call_operand.vmem [shape: f32[1,10], index: 6, kind: input, shape index: {}]   ;;  %s2023_s7 = inlined_call_operand.vmem [shape: bf16[10,80], index: 7, kind: input, shape index: {}]   ;;  %s2024_s8 = inlined_call_operand.vmem [shape: f32[16,80], index: 8, kind: input, shape index: {}]   ;;  %s2025_s9 = inlined_call_operand.vmem [shape: bf16[2,16], index: 9, kind: input, shape index: {}]   ;;  %s2026_s10 = inlined_call_operand.vmem [shape: bf16[80,27], index: 10, kind: input, shape index: {}]   ;;  %s2027_s11 = inlined_call_operand.vmem [shape: f32[1,27], index: 11, kind: input, shape index: {}]   ;;  %s2028_s12 = inlined_call_operand.vmem [shape: bf16[27,3], index: 12, kind: input, shape index: {}]   ;;  %s2029_s13 = inlined_call_operand.vmem [shape: f32[1,3], index: 13, kind: input, shape index: {}]   ;;  %s2030_s14 = inlined_call_operand.hbm [shape: f32[2,3], index: 14, kind: output, shape index: {}]  }
   0x1   :  { %v1248_v0 = vld [vmem:[%s2016_s0 + $0x31] ss:$3 sm:$0xff]  ;;  %v1249_v1 = vld [vmem:[%s2016_s0 + $0x49] ss:$3 sm:$0xff]  ;;  %v1246_v3 = vld [vmem:[%s2016_s0 + $0x1] ss:$3 sm:$0xff]  ;;  %406 = vmatprep.subr.bf16.mxu0 %v1538_v16  ;;  %744 = vmatprep.subr.bf16.mxu1 %v1538_v16 }
   0x2   :  { %v1415_v2 = vpack.i.bf16 %v1249_v1, %v1248_v0  ;;  %v1247_v4 = vld [vmem:[%s2016_s0 + $0x19] ss:$3 sm:$0xff]  ;;  %v1253_v5 = vld [vmem:[%s2016_s0 + $0x32] ss:$3 sm:$0xff]  ;;  %v1252_v9 = vld [vmem:[%s2016_s0 + $0x1a] ss:$3 sm:$0xff] }
   0x3   :  { %v1405_v6 = vpack.i.bf16 %v1247_v4, %v1246_v3  ;;  %v1254_v7 = vld [vmem:[%s2016_s0 + $0x4a] ss:$3 sm:$0xff]  ;;  %v1251_v8 = vld [vmem:[%s2016_s0 + $0x2] ss:$3 sm:$0xff]  ;;  %v1267_v13 = vld [vmem:[%s2016_s0 + $0x8c] ss:$3 sm:$0xff] }
   0x4   :  { %1416 = vrot.lane.b32.xlu1 %v1415_v2, %s1537_s29  ;;  %v1420_v10 = vpack.i.bf16 %v1254_v7, %v1253_v5  ;;  %v1410_v11 = vpack.i.bf16 %v1252_v9, %v1251_v8  ;;  %v1266_v12 = vld [vmem:[%s2016_s0 + $0x74] ss:$3 sm:$0xff]  ;;  %v1261_v14 = vld [vmem:[%s2016_s0 + $0x73] ss:$3 sm:$0xff]  ;;  %v1264_v30 = vld [vmem:[%s2016_s0 + $0xbb] ss:$3 sm:$0xff] }
   0x5   :  { %1406 = vrot.lane.b32.xlu0 %v1405_v6, %s1537_s29  ;;  %v1262_v15 = vld [vmem:[%s2016_s0 + $0x8b] ss:$3 sm:$0xff]  ;;  %v1430_v18 = vpack.i.bf16 %v1267_v13, %v1266_v12  ;;  %v1250_v19 = vld [vmem:[%s2016_s0 + $0x61] ss:$3 sm:$0x3f] }
   0x6   :  { %v1475_v17 = vld [vmem:[%s2017_s1] sm:$0xff]   ;;  %v1425_v21 = vpack.i.bf16 %v1262_v15, %v1261_v14  ;;  %v1476_v22 = vld [vmem:[%s2017_s1 + $0x8] sm:$0xff]   ;;  %v1477_v25 = vld [vmem:[%s2017_s1 + $0x10] sm:$0xff]  }
   0x7   :  { %v1263_v20 = vld [vmem:[%s2016_s0 + $0xa3] ss:$3 sm:$0xff]  ;;  %407 = vmatpush1.bf16.msra.mxu0 %v1475_v17  ;;  %v1255_v23 = vld [vmem:[%s2016_s0 + $0x62] ss:$3 sm:$0x3f] }
   0x8   :  { %1421 = vrot.lane.b32.xlu1 %v1420_v10, %s1539_s24  ;;  %408 = vmatprep.subr.bf16.mxu0 %v1538_v16  ;;  %v1268_v24 = vld [vmem:[%s2016_s0 + $0xa4] ss:$3 sm:$0xff]  ;;  %v1435_v26 = vpack.i.bf16 %v1263_v20, %v1250_v19  ;;  %v1269_v27 = vld [vmem:[%s2016_s0 + $0xbc] ss:$3 sm:$0xff] }
   0x9   :  { %1411 = vrot.lane.b32.xlu0 %v1410_v11, %s1539_s24  ;;  %v1440_v28 = vpack.i.bf16 %v1269_v27, %v1268_v24  ;;  %v1478_v29 = vld [vmem:[%s2017_s1 + $0x18] sm:$0xff]   ;;  %v1479_v33 = vld [vmem:[%s2017_s1 + $0x20] sm:$0xff]   ;;  %v1480_v34 = vld [vmem:[%s2017_s1 + $0x28] sm:$0xff]  }
   0xa   :  { %v1270_v31 = vld [vmem:[%s2016_s0 + $0xd4] ss:$3 sm:$0x3f]  ;;  %v1265_v32 = vld [vmem:[%s2016_s0 + $0xd3] ss:$3 sm:$0x3f] }
   0xb   :  { %409 = vmatpush1.bf16.msra.mxu0 %v1476_v22  ;;  %v1481_v35 = vld [vmem:[%s2017_s1 + $0x30] sm:$0xff]   ;;  %v1482_v36 = vld [vmem:[%s2017_s1 + $0x38] sm:$0xff]   ;;  %v1483_v37 = vld [vmem:[%s2017_s1 + $0x40] sm:$0xff]  }
   0xc   :  { %1431 = vrot.lane.b32.xlu1 %v1430_v18, %s1539_s24  ;;  %410 = vmatprep.subr.bf16.mxu0 %v1538_v16  ;;  %v1484_v38 = vld [vmem:[%s2017_s1 + $0x48] sm:$0xff]  }
   0xd   :  { %1426 = vrot.lane.b32.xlu0 %v1425_v21, %s1537_s29 }
   0xf   :  { %411 = vmatpush1.bf16.msra.mxu0 %v1477_v25 }
  0x10   :  { %111 = vrot.lane.b32.xlu1 %v1255_v23, %s1539_s24  ;;  %412 = vmatprep.subr.bf16.mxu0 %v1538_v16 }
  0x11   :  { %1436 = vrot.lane.b32.xlu0 %v1435_v26, %s1537_s29 }
  0x13   :  { %413 = vmatpush1.bf16.msra.mxu0 %v1478_v29 }
  0x14   :  { %1441 = vrot.lane.b32.xlu1 %v1440_v28, %s1539_s24  ;;  %414 = vmatprep.subr.bf16.mxu0 %v1538_v16 }
  0x15   :  { %171 = vrot.lane.b32.xlu0 %v1264_v30, %s1537_s29 }
  0x17   :  { %415 = vmatpush1.bf16.msra.mxu0 %v1479_v33 }
  0x18   :  { %193 = vrot.lane.b32.xlu1 %v1270_v31, %s1539_s24  ;;  %416 = vmatprep.subr.bf16.mxu0 %v1538_v16 }
  0x19   :  { %173 = vrot.lane.b32.xlu0 %v1265_v32, %s1537_s29 }
  0x1b   :  { %417 = vmatpush1.bf16.msra.mxu0 %v1480_v34 }
  0x1c   :  { %418 = vmatprep.subr.bf16.mxu0 %v1538_v16 }
  0x1f   :  { %419 = vmatpush1.bf16.msra.mxu0 %v1481_v35 }
  0x20   :  { %420 = vmatprep.subr.bf16.mxu0 %v1538_v16 }
  0x23   :  { %421 = vmatpush1.bf16.msra.mxu0 %v1482_v36 }
  0x24   :  { %422 = vmatprep.subr.bf16.mxu0 %v1538_v16 }
  0x27   :  { %423 = vmatpush1.bf16.msra.mxu0 %v1483_v37 }
  0x28   :  { %424 = vmatprep.subr.bf16.mxu0 %v1538_v16 }
  0x29   :  { %19 = vsyncpa [#allocation5], 0  ;;  %v1485_v39 = vld [vmem:[%s2017_s1 + $0x50] sm:$0xff]   ;;  %v1486_v40 = vld [vmem:[%s2017_s1 + $0x58] sm:$0xff]   ;;  %vm118_vm0 = vcmask 654336   ;;  %vm124_vm1 = vcmask 261120  }
  0x2a   :  { %v1487_v41 = vld [vmem:[%s2017_s1 + $0x60] sm:$0xff]   ;;  %v1488_v42 = vld [vmem:[%s2017_s1 + $0x68] sm:$0xff]   ;;  %v1489_v43 = vld [vmem:[%s2017_s1 + $0x70] sm:$0xff]   ;;  %vm390_vm2 = vcmask 916480   ;;  %vm220_vm3 = vcmask 1045504   ;;  %vm509_vm5 = vcmask 424960  }
  0x2b   :  { %425 = vmatpush1.bf16.msra.mxu0 %v1484_v38  ;;  %v49_v51 = vld [vmem:[%s2016_s0] ss:$3 sm:$0xff]  ;;  %v1242_v52 = vld [vmem:[%s2016_s0 + $0x18] ss:$3 sm:$0xff]  ;;  %v1243_v12 = vld [vmem:[%s2016_s0 + $0x30] ss:$3 sm:$0xff] }
  0x2c   :  { %426 = vmatprep.subr.bf16.mxu0 %v1538_v16  ;;  %v1244_v13 = vld [vmem:[%s2016_s0 + $0x48] ss:$3 sm:$0xff]  ;;  %v1256_v14 = vld [vmem:[%s2016_s0 + $0x72] ss:$3 sm:$0xff]  ;;  %v1257_v15 = vld [vmem:[%s2016_s0 + $0x8a] ss:$3 sm:$0xff] }
  0x2d   :  { %v1245_v29 = vld [vmem:[%s2016_s0 + $0x60] ss:$3 sm:$0x3f]  ;;  %s1541_s29 = smov 104   ;;  %vm519_vm15 = vcmask 420864   ;;  %s1545_s25 = smov 24  }
  0x2f   :  { %427 = vmatpush1.bf16.msra.mxu0 %v1485_v39 }
  0x30   :  { %428 = vmatprep.subr.bf16.mxu0 %v1538_v16 }
  0x33   :  { %429 = vmatpush1.bf16.msra.mxu0 %v1486_v40 }
  0x34   :  { %430 = vmatprep.subr.bf16.mxu0 %v1538_v16 }
  0x37   :  { %431 = vmatpush1.bf16.msra.mxu0 %v1487_v41 }
  0x38   :  { %432 = vmatprep.subr.bf16.mxu0 %v1538_v16 }
  0x3b   :  { %433 = vmatpush1.bf16.msra.mxu0 %v1488_v42 }
  0x3c   :  { %434 = vmatprep.subr.bf16.mxu0 %v1538_v16 }
  0x3f   :  { %435 = vmatpush1.bf16.msra.mxu0 %v1489_v43  ;;  %v1258_v43 = vld [vmem:[%s2016_s0 + $0xa2] ss:$3 sm:$0xff] }
  0x76   :  { %v1417_v44 = vpop.permute.xlu1 %1416 }
  0x77   :  { %v1407_v45 = vpop.permute.xlu0 %1406  ;;  %v1419_v46 = vunpack.i.h.bf16 %v1417_v44  ;;  %v1418_v47 = vunpack.i.l.bf16 %v1417_v44  ;;  %v1259_v44 = vld [vmem:[%s2016_s0 + $0xba] ss:$3 sm:$0xff] }
  0x78   :  { %v1409_v48 = vunpack.i.h.bf16 %v1407_v45  ;;  %v1408_v49 = vunpack.i.l.bf16 %v1407_v45 }
  0x79   :  { %v121_v22 = vsel %vm118_vm0, %v1243_v12, %v1418_v47  ;;  %v122_v23 = vsel %vm118_vm0, %v1244_v13, %v1419_v46  ;;  %v1852_v12 = vld [vmem:[%s2018_s2] ss:$0 sm:$0xff]  ;;  %s1547_s2 = smov [#allocation4]  }
  0x7a   :  { %v1422_v50 = vpop.permute.xlu1 %1421  ;;  %v119_v60 = vsel %vm118_vm0, %v49_v51, %v1408_v49  ;;  %v120_v61 = vsel %vm118_vm0, %v1242_v52, %v1409_v48  ;;  %v255_v34 = vpack.c.bf16 %v122_v23, %v121_v22  ;;  %s1234_s26 = sshll.u32 %s1547_s2, 4  ;;  %s1235_s26 = int_to_ptr.vmem [resolvable:$true] %s1234_s26 }
  0x7b   :  { %v1424_v53 = vunpack.i.h.bf16 %v1422_v50  ;;  %v1423_v54 = vunpack.i.l.bf16 %v1422_v50  ;;  %v1412_v55 = vpop.permute.xlu0 %1411  ;;  %v253_v8 = vpack.c.bf16 %v120_v61, %v119_v60  ;;  %p1518_p1 = scmp.lt.s32.totalorder %s1235_s26, %s1235_s26 }
  0x7c   :  { %v1414_v56 = vunpack.i.h.bf16 %v1412_v55  ;;  %v1413_v57 = vunpack.i.l.bf16 %v1412_v55 }
  0x7d   :  { %v127_v58 = vsel %vm124_vm1, %v1418_v47, %v1423_v54  ;;  %v128_v59 = vsel %vm124_vm1, %v1419_v46, %v1424_v53 }
  0x7e   :  { %v1432_v62 = vpop.permute.xlu1 %1431  ;;  %v125_v63 = vsel %vm124_vm1, %v1408_v49, %v1413_v57  ;;  %v126_v0 = vsel %vm124_vm1, %v1409_v48, %v1414_v56  ;;  %v256_v1 = vpack.c.bf16 %v128_v59, %v127_v58  ;;  %v1260_v59 = vld [vmem:[%s2016_s0 + $0xd2] ss:$3 sm:$0x3f] }
  0x7f   :  { %v1434_v2 = vunpack.i.h.bf16 %v1432_v62  ;;  %v1433_v3 = vunpack.i.l.bf16 %v1432_v62  ;;  %v1427_v4 = vpop.permute.xlu0 %1426  ;;  %v254_v5 = vpack.c.bf16 %v126_v0, %v125_v63 }
  0x80   :  { %v1429_v6 = vunpack.i.h.bf16 %v1427_v4  ;;  %v1428_v7 = vunpack.i.l.bf16 %v1427_v4 }
  0x81   :  { %1287 = vmatprep.mubr.msk.bf16.mxu0 %vm390_vm2, %v254_v5  ;;  %v1490_v5 = vld [vmem:[%s2019_s3] sm:$0xff]  }
  0x82   :  { %v206_v9 = vsel %vm124_vm1, %v1429_v6, %v1434_v2  ;;  %v205_v10 = vsel %vm124_vm1, %v1428_v7, %v1433_v3  ;;  %439 = vmatmul.mubr.bf16.vlgmr.msra.gmra.mrb[0].mxu0 %v253_v8  ;;  %v112_v11 = vpop.permute.xlu1 %111  ;;  %v201_v25 = vsel %vm118_vm0, %v1257_v15, %v1429_v6  ;;  %v200_v26 = vsel %vm118_vm0, %v1256_v14, %v1428_v7  ;;  %v1491_v6 = vld [vmem:[%s2019_s3 + $0x8] sm:$0xff]   ;;  %v1492_v7 = vld [vmem:[%s2019_s3 + $0x10] sm:$0xff]   ;;  %v1493_v8 = vld [vmem:[%s2019_s3 + $0x18] sm:$0xff]  }
  0x83   :  { %v225_v17 = vrot.slane %v206_v9, 2  ;;  %v222_v18 = vrot.slane %v205_v10, 2  ;;  %v1437_v19 = vpop.permute.xlu0 %1436  ;;  %1288 = vmatprep.mubr.msk.bf16.mxu0 %vm390_vm2, %v256_v1  ;;  %v223_v36 = vrot.slane %v201_v25, 2  ;;  %v221_v37 = vrot.slane %v200_v26, 2  ;;  %745 = vmatpush1.bf16.msra.mxu1 %v1490_v5  ;;  %v1494_v9 = vld [vmem:[%s2019_s3 + $0x20] sm:$0xff]   ;;  %v1495_v10 = vld [vmem:[%s2019_s3 + $0x28] sm:$0xff]  }
  0x84   :  { %v1438_v20 = vunpack.i.l.bf16 %v1437_v19  ;;  %v1439_v21 = vunpack.i.h.bf16 %v1437_v19  ;;  %746 = vmatprep.subr.bf16.mxu1 %v1538_v16 }
  0x85   :  { %v226_v24 = vsel %vm220_vm3, %v222_v18, %v225_v17  ;;  %v224_v47 = vsel %vm220_vm3, %v221_v37, %v223_v36 }
  0x86   :  { %v129_v27 = vsel %vm124_vm1, %v1438_v20, %v112_v11  ;;  %v1442_v28 = vpop.permute.xlu1 %1441  ;;  %v123_v40 = vsel %vm118_vm0, %v1245_v29, %v1438_v20  ;;  %v202_v49 = vsel %vm118_vm0, %v1258_v43, %v1439_v21  ;;  %v1496_v11 = vld [vmem:[%s2019_s3 + $0x30] sm:$0xff]   ;;  %v1499_v43 = vld [vmem:[%s2019_s3 + $0x48] sm:$0x3f]  }
  0x87   :  { %v1444_v30 = vunpack.i.h.bf16 %v1442_v28  ;;  %v1443_v31 = vunpack.i.l.bf16 %v1442_v28  ;;  %v172_v32 = vpop.permute.xlu0 %171  ;;  %v252_v33 = vsel %vm220_vm3, %v129_v27, %v222_v18  ;;  %v251_v48 = vsel %vm220_vm3, %v123_v40, %v221_v37  ;;  %747 = vmatpush1.bf16.msra.mxu1 %v1491_v6 }
  0x88   :  { %v258_v35 = vpack.c.bf16 %v226_v24, %v252_v33  ;;  %v203_v50 = vsel %vm118_vm0, %v1259_v44, %v172_v32  ;;  %v257_v54 = vpack.c.bf16 %v224_v47, %v251_v48  ;;  %v227_v55 = vrot.slane %v202_v49, 2  ;;  %748 = vmatprep.subr.bf16.mxu1 %v1538_v16 }
  0x89   :  { %v207_v38 = vsel %vm124_vm1, %v1439_v21, %v1443_v31  ;;  %v208_v39 = vsel %vm124_vm1, %v172_v32, %v1444_v30  ;;  %v231_v56 = vrot.slane %v203_v50, 2  ;;  %v1497_v31 = vld [vmem:[%s2019_s3 + $0x38] sm:$0xff]  }
  0x8a   :  { %v229_v41 = vrot.slane %v207_v38, 2  ;;  %v233_v42 = vrot.slane %v208_v39, 2  ;;  %447 = vmatmul.mubr.bf16.gmra.mrb[4].mxu0 %v255_v34  ;;  %v194_v45 = vpop.permute.xlu1 %193  ;;  %v228_v60 = vsel %vm220_vm3, %v223_v36, %v227_v55 }
  0x8b   :  { %1289 = vmatprep.mubr.msk.bf16.mxu0 %vm390_vm2, %v258_v35  ;;  %v174_v46 = vpop.permute.xlu0 %173  ;;  %v232_v61 = vsel %vm220_vm3, %v227_v55, %v231_v56  ;;  %749 = vmatpush1.bf16.msra.mxu1 %v1492_v7  ;;  %v1498_v35 = vld [vmem:[%s2019_s3 + $0x40] sm:$0xff]   ;;  %s1540_s3 = smov 52  }
  0x8c   :  { %v234_v51 = vsel %vm220_vm3, %v229_v41, %v233_v42  ;;  %v230_v52 = vsel %vm220_vm3, %v225_v17, %v229_v41  ;;  %v209_v53 = vsel %vm124_vm1, %v174_v46, %v194_v45  ;;  %v204_v62 = vsel %vm118_vm0, %v1260_v59, %v174_v46  ;;  %750 = vmatprep.subr.bf16.mxu1 %v1538_v16 }
  0x8d   :  { %v260_v57 = vpack.c.bf16 %v234_v51, %v230_v52  ;;  %v237_v58 = vrot.slane %v209_v53, 2  ;;  %v259_v0 = vpack.c.bf16 %v232_v61, %v228_v60  ;;  %v235_v1 = vrot.slane %v204_v62, 2 }
  0x8e   :  { %v742_v46 = vsel %vm220_vm3, %v1499_v43, 0  ;;  %vm565_vm1 = vcmask 850944  }
  0x8f   :  { %v238_v63 = vsel %vm220_vm3, %v233_v42, %v237_v58  ;;  %v236_v3 = vsel %vm220_vm3, %v231_v56, %v235_v1  ;;  %751 = vmatpush1.bf16.msra.mxu1 %v1493_v8 }
  0x90   :  { %v262_v2 = vpack.c.bf16 %v237_v58, %v238_v63  ;;  %v261_v4 = vpack.c.bf16 %v235_v1, %v236_v3  ;;  %752 = vmatprep.subr.bf16.mxu1 %v1538_v16 }
  0x92   :  { %455 = vmatmul.mubr.bf16.gmra.mrb[8].mxu0 %v257_v54 }
  0x93   :  { %1290 = vmatprep.mubr.msk.bf16.mxu0 %vm390_vm2, %v260_v57  ;;  %753 = vmatpush1.bf16.msra.mxu1 %v1494_v9 }
  0x94   :  { %754 = vmatprep.subr.bf16.mxu1 %v1538_v16 }
  0x97   :  { %755 = vmatpush1.bf16.msra.mxu1 %v1495_v10 }
  0x98   :  { %756 = vmatprep.subr.bf16.mxu1 %v1538_v16 }
  0x9a   :  { %463 = vmatmul.mubr.bf16.gmra.mrb[12].mxu0 %v259_v0 }
  0x9b   :  { %1291 = vmatprep.mubr.msk.bf16.mxu0 %vm390_vm2, %v262_v2  ;;  %757 = vmatpush1.bf16.msra.mxu1 %v1496_v11  ;;  %vm731_vm2 = vcmask 228352  }
  0x9c   :  { %758 = vmatprep.subr.bf16.mxu1 %v1538_v16 }
  0x9f   :  { %759 = vmatpush1.bf16.msra.mxu1 %v1497_v31 }
  0xa0   :  { %760 = vmatprep.subr.bf16.mxu1 %v1538_v16 }
  0xa2   :  { %471 = vmatmul.mubr.bf16.gmra.mrb[16].mxu0 %v261_v4 }
  0xa3   :  { %761 = vmatpush1.bf16.msra.mxu1 %v1498_v35 }
  0xa4   :  { %762 = vmatprep.subr.bf16.mxu1 %v1538_v16 }
  0xa7   :  { %763 = vmatpush1.bf16.msra.mxu1 %v742_v46 }
 0x155   :  { %v440_v13 = vpop.f32.mrb[0].mxu0 }
 0x156   :  { %v441_v14 = vadd.f32 %v1852_v12, %v440_v13  ;;  %v442_v15 = vpop.f32.mrb[1].mxu0 }
 0x157   :  { %v443_v17 = vpop.f32.mrb[2].mxu0 }
 0x158   :  { %vm479_vm4 = vcmp.ge.f32.partialorder %v441_v14, 0.0  ;;  %v489_v18 = vmul.f32 0.01, %v441_v14  ;;  %v444_v19 = vadd.f32 %v1852_v12, %v443_v17  ;;  %v445_v20 = vpop.f32.mrb[3].mxu0 }
 0x15a   :  { %v499_v21 = vsel %vm479_vm4, %v441_v14, %v489_v18  ;;  %vm480_vm6 = vcmp.ge.f32.partialorder %v444_v19, 0.0  ;;  %v490_v22 = vmul.f32 0.01, %v444_v19  ;;  %vm620_vm4 = vcmask 1041408  }
 0x15b   :  { %510 = vst.msk [vmem:[#allocation2] sm:$0xff] %vm509_vm5, %v499_v21 }
 0x15c   :  { %v500_v23 = vsel %vm480_vm6, %v444_v19, %v490_v22  ;;  %vm815_vm6 = vcmask 195584  }
 0x15d   :  { %511 = vst.msk [vmem:[#allocation2 + $0x8] sm:$0xff] %vm509_vm5, %v500_v23  ;;  %v448_v24 = vpop.f32.mrb[4].mxu0 }
 0x15e   :  { %v449_v25 = vadd.f32 %v1852_v12, %v448_v24  ;;  %v450_v26 = vpop.f32.mrb[5].mxu0 }
 0x15f   :  { %v451_v27 = vpop.f32.mrb[6].mxu0 }
 0x160   :  { %vm481_vm7 = vcmp.ge.f32.partialorder %v449_v25, 0.0  ;;  %v491_v28 = vmul.f32 0.01, %v449_v25  ;;  %v452_v29 = vadd.f32 %v1852_v12, %v451_v27  ;;  %v453_v30 = vpop.f32.mrb[7].mxu0 }
 0x162   :  { %v501_v32 = vsel %vm481_vm7, %v449_v25, %v491_v28  ;;  %vm482_vm8 = vcmp.ge.f32.partialorder %v452_v29, 0.0  ;;  %v492_v33 = vmul.f32 0.01, %v452_v29 }
 0x163   :  { %512 = vst.msk [vmem:[#allocation2 + $0x10] sm:$0xff] %vm509_vm5, %v501_v32 }
 0x164   :  { %v502_v34 = vsel %vm482_vm8, %v452_v29, %v492_v33  ;;  %v527_v48 = vld [vmem:[#allocation2 + $0x1] ss:$2 sm:$0xff]  ;;  %v521_v25 = vld [vmem:[#allocation2] ss:$2 sm:$0xff] }
 0x165   :  { %513 = vst.msk [vmem:[#allocation2 + $0x18] sm:$0xff] %vm509_vm5, %v502_v34  ;;  %v456_v36 = vpop.f32.mrb[8].mxu0 }
 0x166   :  { %v457_v37 = vadd.f32 %v1852_v12, %v456_v36  ;;  %v458_v38 = vpop.f32.mrb[9].mxu0 }
 0x167   :  { %v459_v39 = vpop.f32.mrb[10].mxu0 }
 0x168   :  { %vm483_vm9 = vcmp.ge.f32.partialorder %v457_v37, 0.0  ;;  %v493_v40 = vmul.f32 0.01, %v457_v37  ;;  %v460_v41 = vadd.f32 %v1852_v12, %v459_v39  ;;  %v461_v42 = vpop.f32.mrb[11].mxu0 }
 0x16a   :  { %v503_v44 = vsel %vm483_vm9, %v457_v37, %v493_v40  ;;  %vm484_vm10 = vcmp.ge.f32.partialorder %v460_v41, 0.0  ;;  %v494_v45 = vmul.f32 0.01, %v460_v41  ;;  %v533_v57 = vld [vmem:[#allocation2 + $0x2] ss:$2 sm:$0xff] }
 0x16b   :  { %514 = vst.msk [vmem:[#allocation2 + $0x20] sm:$0xff] %vm509_vm5, %v503_v44 }
 0x16c   :  { %v504_v47 = vsel %vm484_vm10, %v460_v41, %v494_v45  ;;  %v529_v49 = vld [vmem:[#allocation2 + $0x11] ss:$2 sm:$0xff]  ;;  %v523_v24 = vld [vmem:[#allocation2 + $0x10] ss:$2 sm:$0xff] }
 0x16d   :  { %515 = vst.msk [vmem:[#allocation2 + $0x28] sm:$0xff] %vm509_vm5, %v504_v47  ;;  %v464_v50 = vpop.f32.mrb[12].mxu0  ;;  %v1445_v51 = vpack.i.bf16 %v529_v49, %v527_v48 }
 0x16e   :  { %v465_v16 = vadd.f32 %v1852_v12, %v464_v50  ;;  %v466_v52 = vpop.f32.mrb[13].mxu0 }
 0x16f   :  { %v467_v53 = vpop.f32.mrb[14].mxu0  ;;  %1446 = vrot.lane.b32.xlu0 %v1445_v51, %s1540_s3 }
 0x170   :  { %vm485_vm11 = vcmp.ge.f32.partialorder %v465_v16, 0.0  ;;  %v495_v54 = vmul.f32 0.01, %v465_v16  ;;  %v468_v55 = vadd.f32 %v1852_v12, %v467_v53  ;;  %v469_v56 = vpop.f32.mrb[15].mxu0 }
 0x172   :  { %v505_v58 = vsel %vm485_vm11, %v465_v16, %v495_v54  ;;  %vm486_vm12 = vcmp.ge.f32.partialorder %v468_v55, 0.0  ;;  %v496_v59 = vmul.f32 0.01, %v468_v55  ;;  %v535_v60 = vld [vmem:[#allocation2 + $0x12] ss:$2 sm:$0xff]  ;;  %vm820_vm11 = vcmask 191488  }
 0x173   :  { %516 = vst.msk [vmem:[#allocation2 + $0x30] sm:$0xff] %vm509_vm5, %v505_v58  ;;  %v1450_v61 = vpack.i.bf16 %v535_v60, %v533_v57  ;;  %v537_v17 = vld [vmem:[#allocation2 + $0x22] ss:$2 sm:$0x3] }
 0x174   :  { %v506_v62 = vsel %vm486_vm12, %v468_v55, %v496_v59  ;;  %v525_v53 = vld [vmem:[#allocation2 + $0x20] ss:$2 sm:$0x3]  ;;  %vm902_vm12 = vcmask 1043456  }
 0x175   :  { %517 = vst.msk [vmem:[#allocation2 + $0x38] sm:$0xff] %vm509_vm5, %v506_v62  ;;  %v472_v63 = vpop.f32.mrb[16].mxu0  ;;  %1451 = vrot.lane.b32.xlu1 %v1450_v61, %s1541_s29 }
 0x176   :  { %v473_v0 = vadd.f32 %v1852_v12, %v472_v63  ;;  %v474_v1 = vpop.f32.mrb[17].mxu0 }
 0x177   :  { %v475_v2 = vpop.f32.mrb[18].mxu0 }
 0x178   :  { %vm487_vm13 = vcmp.ge.f32.partialorder %v473_v0, 0.0  ;;  %v497_v3 = vmul.f32 0.01, %v473_v0  ;;  %v476_v4 = vadd.f32 %v1852_v12, %v475_v2  ;;  %v477_v5 = vpop.f32.mrb[19].mxu0 }
 0x179   :  { %v531_v12 = vld [vmem:[#allocation2 + $0x21] ss:$2 sm:$0x3] }
 0x17a   :  { %v507_v6 = vsel %vm487_vm13, %v473_v0, %v497_v3  ;;  %vm488_vm14 = vcmp.ge.f32.partialorder %v476_v4, 0.0  ;;  %v498_v7 = vmul.f32 0.01, %v476_v4  ;;  %v582_v9 = vld [vmem:[#allocation2 + $0x28] ss:$2 sm:$0xff]  ;;  %vm1543_vm13 = vmmov 0  }
 0x17b   :  { %518 = vst.msk [vmem:[#allocation2 + $0x40] sm:$0xff] %vm509_vm5, %v507_v6  ;;  %v576_v11 = vld [vmem:[#allocation2 + $0x27] ss:$2 sm:$0xff]  ;;  %v570_v40 = vld [vmem:[#allocation2 + $0x26] ss:$2 sm:$0xff] }
 0x17c   :  { %v508_v8 = vsel %vm488_vm14, %v476_v4, %v498_v7  ;;  %v1500_v7 = vld [vmem:[%s2021_s5] sm:$0xff]   ;;  %vm836_vm14 = vcmask 392192  }
 0x17d   :  { %520 = vst.msk [vmem:[#allocation2 + $0x48] sm:$0xf] %vm519_vm15, %v508_v8  ;;  %v1542_v8 = vmov 0.0   ;;  %vm898_vm15 = vcmask 588800  }
 0x17e   :  { %1346 = vmatprep.subr.bf16.mxu1 %v1542_v8  ;;  %1372 = vmatprep.subr.bf16.mxu0 %v1542_v8 }
 0x17f   :  { %1382 = vmatprep.mubr.msk.bf16.mxu0 %vm1543_vm13, %v1542_v8 }
 0x182   :  { %v584_v10 = vld [vmem:[#allocation2 + $0x38] ss:$2 sm:$0xff]  ;;  %v578_v13 = vld [vmem:[#allocation2 + $0x37] ss:$2 sm:$0xff] }
 0x183   :  { %v1460_v14 = vpack.i.bf16 %v584_v10, %v582_v9  ;;  %v1455_v15 = vpack.i.bf16 %v578_v13, %v576_v11  ;;  %v572_v41 = vld [vmem:[#allocation2 + $0x36] ss:$2 sm:$0xff]  ;;  %v1501_v9 = vld [vmem:[%s2021_s5 + $0x8] sm:$0xff]  }
 0x184   :  { %v586_v18 = vld [vmem:[#allocation2 + $0x48] ss:$2 sm:$0x3]  ;;  %v580_v19 = vld [vmem:[#allocation2 + $0x47] ss:$2 sm:$0x3] }
 0x185   :  { %1461 = vrot.lane.b32.xlu1 %v1460_v14, %s1541_s29  ;;  %1456 = vrot.lane.b32.xlu0 %v1455_v15, %s1540_s3  ;;  %v574_v59 = vld [vmem:[#allocation2 + $0x46] ss:$2 sm:$0x3]  ;;  %v1502_v10 = vld [vmem:[%s2021_s5 + $0x10] sm:$0xff]   ;;  %v1503_v11 = vld [vmem:[%s2021_s5 + $0x18] sm:$0xff]  }
 0x186   :  { %v1292_v13 = vld [vmem:[%s2020_s4] ss:$0 sm:$0xff] }
 0x189   :  { %557 = vrot.lane.b32.xlu1 %v537_v17, %s1541_s29  ;;  %545 = vrot.lane.b32.xlu0 %v531_v12, %s1540_s3 }
 0x18d   :  { %606 = vrot.lane.b32.xlu1 %v586_v18, %s1541_s29  ;;  %594 = vrot.lane.b32.xlu0 %v580_v19, %s1540_s3 }
 0x1e1   :  { %v1447_v20 = vpop.permute.xlu0 %1446 }
 0x1e2   :  { %v1449_v21 = vunpack.i.h.bf16 %v1447_v20  ;;  %v1448_v22 = vunpack.i.l.bf16 %v1447_v20 }
 0x1e4   :  { %v563_v28 = vsel %vm509_vm5, %v523_v24, %v1449_v21  ;;  %v562_v29 = vsel %vm509_vm5, %v521_v25, %v1448_v22 }
 0x1e7   :  { %v1452_v23 = vpop.permute.xlu1 %1451 }
 0x1e8   :  { %v1454_v26 = vunpack.i.h.bf16 %v1452_v23  ;;  %v1453_v27 = vunpack.i.l.bf16 %v1452_v23 }
 0x1ea   :  { %v640_v30 = vpack.c.bf16 %v1454_v26, %v1453_v27  ;;  %v566_v31 = vsel %vm565_vm1, %v562_v29, %v1453_v27  ;;  %v567_v32 = vsel %vm565_vm1, %v563_v28, %v1454_v26 }
 0x1eb   :  { %v639_v33 = vpack.c.bf16 %v567_v32, %v566_v31 }
 0x1ec   :  { %1303 = vmatprep.mubr.msk.bf16.mxu1 %vm731_vm2, %v640_v30 }
 0x1ed   :  { %777 = vmatmul.mubr.bf16.vlgmr.msra.gmra.mrb[0].mxu1 %v639_v33 }
 0x1ee   :  { %1347 = vmatpush3.bf16.msra.mxu1 %v1500_v7 }
 0x1ef   :  { %1348 = vmatprep.subr.bf16.mxu1 %v1542_v8 }
 0x1f2   :  { %1349 = vmatpush3.bf16.msra.mxu1 %v1501_v9 }
 0x1f3   :  { %1350 = vmatprep.subr.bf16.mxu1 %v1542_v8 }
 0x1f6   :  { %1351 = vmatpush3.bf16.msra.mxu1 %v1502_v10 }
 0x1f7   :  { %v1462_v34 = vpop.permute.xlu1 %1461  ;;  %v1457_v35 = vpop.permute.xlu0 %1456  ;;  %1352 = vmatprep.subr.bf16.mxu1 %v1542_v8 }
 0x1f8   :  { %v1464_v36 = vunpack.i.h.bf16 %v1462_v34  ;;  %v1463_v37 = vunpack.i.l.bf16 %v1462_v34  ;;  %v1459_v38 = vunpack.i.h.bf16 %v1457_v35  ;;  %v1458_v39 = vunpack.i.l.bf16 %v1457_v35 }
 0x1fa   :  { %v625_v42 = vrot.slane %v1464_v36, 6  ;;  %v622_v43 = vrot.slane %v1463_v37, 6  ;;  %v612_v44 = vsel %vm509_vm5, %v572_v41, %v1459_v38  ;;  %v611_v45 = vsel %vm509_vm5, %v570_v40, %v1458_v39  ;;  %1353 = vmatpush3.bf16.msra.mxu1 %v1503_v11  ;;  %v1504_v40 = vld [vmem:[%s2021_s5 + $0x20] ss:$0 sps:$4 sm:$0xff]   ;;  %s1544_s5 = smov 48  }
 0x1fb   :  { %v615_v46 = vsel %vm565_vm1, %v612_v44, %v1464_v36  ;;  %v614_v47 = vsel %vm565_vm1, %v611_v45, %v1463_v37  ;;  %v558_v48 = vpop.permute.xlu1 %557  ;;  %v546_v49 = vpop.permute.xlu0 %545  ;;  %1354 = vmatprep.subr.bf16.mxu1 %v1542_v8 }
 0x1fc   :  { %v623_v50 = vrot.slane %v615_v46, 6  ;;  %v621_v51 = vrot.slane %v614_v47, 6  ;;  %v626_v16 = vsel %vm620_vm4, %v622_v43, %v625_v42  ;;  %v638_v52 = vsel %vm620_vm4, %v558_v48, %v622_v43 }
 0x1fd   :  { %v642_v54 = vpack.c.bf16 %v626_v16, %v638_v52  ;;  %v564_v55 = vsel %vm509_vm5, %v525_v53, %v546_v49 }
 0x1fe   :  { %v568_v56 = vsel %vm565_vm1, %v564_v55, %v558_v48  ;;  %v624_v57 = vsel %vm620_vm4, %v621_v51, %v623_v50 }
 0x1ff   :  { %v607_v58 = vpop.permute.xlu1 %606  ;;  %v595_v60 = vpop.permute.xlu0 %594  ;;  %1304 = vmatprep.mubr.msk.bf16.mxu1 %vm731_vm2, %v642_v54  ;;  %v637_v61 = vsel %vm620_vm4, %v568_v56, %v621_v51 }
 0x200   :  { %v629_v62 = vrot.slane %v607_v58, 6  ;;  %v613_v63 = vsel %vm509_vm5, %v574_v59, %v595_v60  ;;  %v641_v0 = vpack.c.bf16 %v624_v57, %v637_v61  ;;  %v1505_v61 = vld [vmem:[%s2023_s7] sm:$0x1f]  }
 0x201   :  { %v616_v1 = vsel %vm565_vm1, %v613_v63, %v607_v58  ;;  %vm965_vm1 = vcmask 1044480   ;;  %v1306_v63 = vld [vmem:[%s2022_s6] ss:$0 sm:$0xff] }
 0x202   :  { %v630_v2 = vsel %vm620_vm4, %v625_v42, %v629_v62  ;;  %v627_v3 = vrot.slane %v616_v1, 6  ;;  %785 = vmatmul.mubr.bf16.gmra.mrb[4].mxu1 %v641_v0  ;;  %v904_v42 = vsel %vm902_vm12, %v1504_v40, 0  ;;  %v967_v62 = vsel %vm965_vm1, %v1505_v61, 0 }
 0x203   :  { %v644_v4 = vpack.c.bf16 %v630_v2, %v630_v2  ;;  %1355 = vmatpush3.bf16.msra.mxu1 %v904_v42 }
 0x204   :  { %v628_v5 = vsel %vm620_vm4, %v623_v50, %v627_v3  ;;  %1360 = vmatprep.subr.bf16.mxu1 %v1542_v8 }
 0x205   :  { %1305 = vmatprep.mubr.msk.bf16.mxu1 %vm731_vm2, %v644_v4  ;;  %v643_v6 = vpack.c.bf16 %v628_v5, %v628_v5 }
 0x20a   :  { %793 = vmatmul.mubr.bf16.gmra.mrb[8].mxu1 %v643_v6 }
 0x20b   :  { %1356 = vmatprep.mubr.msk.bf16.mxu1 %vm1543_vm13, %v1542_v8 }
 0x2c0   :  { %v778_v14 = vpop.f32.mrb[0].mxu1 }
 0x2c1   :  { %v779_v15 = vadd.f32 %v1292_v13, %v778_v14  ;;  %v780_v17 = vpop.f32.mrb[1].mxu1  ;;  %v1507_v14 = vld [vmem:[%s2026_s10 + $0x8] sm:$0xff]  }
 0x2c2   :  { %v781_v12 = vpop.f32.mrb[2].mxu1  ;;  %v1509_v17 = vld [vmem:[%s2026_s10 + $0x18] sm:$0xff]  }
 0x2c3   :  { %vm800_vm5 = vcmp.ge.f32.partialorder %v779_v15, 0.0  ;;  %v805_v18 = vmul.f32 0.01, %v779_v15  ;;  %v782_v19 = vadd.f32 %v1292_v13, %v781_v12  ;;  %v783_v20 = vpop.f32.mrb[3].mxu1 }
 0x2c5   :  { %v810_v21 = vsel %vm800_vm5, %v779_v15, %v805_v18  ;;  %vm801_vm7 = vcmp.ge.f32.partialorder %v782_v19, 0.0  ;;  %v806_v22 = vmul.f32 0.01, %v782_v19  ;;  %vm961_vm5 = vcmask 80896   ;;  %v1508_v15 = vld [vmem:[%s2026_s10 + $0x10] sm:$0xff]   ;;  %v1010_v18 = vld [vmem:[%s2024_s8] sm:$0xff] }
 0x2c6   :  { %816 = vst.msk [vmem:[#allocation3] sm:$0xff] %vm815_vm6, %v810_v21 }
 0x2c7   :  { %v811_v23 = vsel %vm801_vm7, %v782_v19, %v806_v22  ;;  %v1011_v19 = vld [vmem:[%s2024_s8 + $0x8] sm:$0xff]  ;;  %vm1226_vm7 = vcmask 17408  }
 0x2c8   :  { %817 = vst.msk [vmem:[#allocation3 + $0x8] sm:$0xff] %vm815_vm6, %v811_v23 }
 0x2cf   :  { %v824_v43 = vld [vmem:[#allocation3 + $0x1] ss:$2 sm:$0xff]  ;;  %v822_v55 = vld [vmem:[#allocation3] ss:$2 sm:$0xff] }
 0x2d5   :  { %v786_v24 = vpop.f32.mrb[4].mxu1 }
 0x2d6   :  { %v787_v25 = vadd.f32 %v1292_v13, %v786_v24  ;;  %v788_v26 = vpop.f32.mrb[5].mxu1 }
 0x2d7   :  { %v789_v27 = vpop.f32.mrb[6].mxu1  ;;  %v1014_v26 = vld [vmem:[%s2025_s9] sm:$0x1] }
 0x2d8   :  { %vm802_vm8 = vcmp.ge.f32.partialorder %v787_v25, 0.0  ;;  %v807_v28 = vmul.f32 0.01, %v787_v25  ;;  %v790_v29 = vadd.f32 %v1292_v13, %v789_v27  ;;  %v791_v30 = vpop.f32.mrb[7].mxu1  ;;  %v1510_v27 = vld [vmem:[%s2026_s10 + $0x20] sm:$0xff]  }
 0x2da   :  { %v812_v31 = vsel %vm802_vm8, %v787_v25, %v807_v28  ;;  %vm803_vm9 = vcmp.ge.f32.partialorder %v790_v29, 0.0  ;;  %v808_v32 = vmul.f32 0.01, %v790_v29 }
 0x2db   :  { %818 = vst.msk [vmem:[#allocation3 + $0x10] sm:$0xff] %vm815_vm6, %v812_v31 }
 0x2dc   :  { %v813_v33 = vsel %vm803_vm9, %v790_v29, %v808_v32 }
 0x2dd   :  { %819 = vst.msk [vmem:[#allocation3 + $0x18] sm:$0xff] %vm815_vm6, %v813_v33  ;;  %v794_v34 = vpop.f32.mrb[8].mxu1  ;;  %v1546_v33 = vmov 65535  }
 0x2de   :  { %v795_v35 = vadd.f32 %v1292_v13, %v794_v34  ;;  %v796_v36 = vpop.f32.mrb[9].mxu1  ;;  %v1506_v13 = vld [vmem:[%s2026_s10] sm:$0xff]   ;;  %v1181_v34 = vsel %vm965_vm1, 4294967295, %v1546_v33 }
 0x2df   :  { %v797_v37 = vpop.f32.mrb[10].mxu1  ;;  %1373 = vmatpush3.bf16.msra.mxu0 %v1506_v13  ;;  %v1182_v36 = vsel %vm220_vm3, %v1181_v34, 0  ;;  %vm1177_vm3 = vcmask 220160  }
 0x2e0   :  { %vm804_vm10 = vcmp.ge.f32.partialorder %v795_v35, 0.0  ;;  %v809_v38 = vmul.f32 0.01, %v795_v35  ;;  %v798_v39 = vpop.f32.mrb[11].mxu1  ;;  %1374 = vmatprep.subr.bf16.mxu0 %v1542_v8  ;;  %v1512_v37 = vld [vmem:[%s2028_s12 + $0x8] sm:$0x3f]  }
 0x2e1   :  { %v1316_v39 = vld [vmem:[%s2027_s11] ss:$0 sm:$0xff]  ;;  %s1513_s11 = scalar_lea.vmem %s1235_s26, 32 }
 0x2e2   :  { %v814_v41 = vsel %vm804_vm10, %v795_v35, %v809_v38  ;;  %v826_v44 = vld [vmem:[#allocation3 + $0x2] ss:$2 sm:$0xff]  ;;  %v1184_v38 = vand.u32 %v1512_v37, %v1182_v36  ;;  %p1514_p0 = scmp.ne.s32.totalorder %s1235_s26, %s1513_s11  ;;  %p1519_p2 = scmp.lt.s32.totalorder %s1513_s11, %s1513_s11 }
 0x2e3   :  { %821 = vst.msk [vmem:[#allocation3 + $0x20] sm:$0xf] %vm820_vm11, %v814_v41  ;;  %1375 = vmatpush3.bf16.msra.mxu0 %v1507_v14  ;;  %v1511_v35 = vld [vmem:[%s2028_s12] sm:$0xff]  }
 0x2e4   :  { %1376 = vmatprep.subr.bf16.mxu0 %v1542_v8  ;;  %p1520_p3 = por %p1519_p2, %p1518_p1 }
 0x2e6   :  { %p1521_p4 = pnand %p1520_p3, %p1514_p0 }
 0x2e7   :  { %1377 = vmatpush3.bf16.msra.mxu0 %v1508_v15 }
 0x2e8   :  { %1378 = vmatprep.subr.bf16.mxu0 %v1542_v8 }
 0x2ea   :  { %v843_v45 = vld [vmem:[#allocation3 + $0x14] ss:$2 sm:$0xff]  ;;  %v841_v46 = vld [vmem:[#allocation3 + $0x13] ss:$2 sm:$0xff] }
 0x2eb   :  { %v1470_v47 = vpack.i.bf16 %v843_v45, %v826_v44  ;;  %v1465_v48 = vpack.i.bf16 %v841_v46, %v824_v43  ;;  %v839_v54 = vld [vmem:[#allocation3 + $0x12] ss:$2 sm:$0xff]  ;;  %1379 = vmatpush3.bf16.msra.mxu0 %v1509_v17 }
 0x2ec   :  { %1380 = vmatprep.subr.bf16.mxu0 %v1542_v8 }
 0x2ed   :  { %1471 = vrot.lane.b32.xlu1 %v1470_v47, %s1544_s5  ;;  %1466 = vrot.lane.b32.xlu0 %v1465_v48, %s1545_s25 }
 0x2ef   :  { %1381 = vmatpush3.bf16.msra.mxu0 %v1510_v27 }
 0x35f   :  { %v1472_v49 = vpop.permute.xlu1 %1471  ;;  %v1467_v50 = vpop.permute.xlu0 %1466 }
 0x360   :  { %v1474_v51 = vunpack.i.h.bf16 %v1472_v49  ;;  %v1473_v16 = vunpack.i.l.bf16 %v1472_v49  ;;  %v1469_v52 = vunpack.i.h.bf16 %v1467_v50  ;;  %v1468_v53 = vunpack.i.l.bf16 %v1467_v50 }
 0x362   :  { %v852_v56 = vsel %vm815_vm6, %v839_v54, %v1469_v52  ;;  %v835_v57 = vsel %vm815_vm6, %v822_v55, %v1468_v53  ;;  %vm1016_vm6 = vcmask 130048  }
 0x363   :  { %v853_v58 = vsel %vm836_vm14, %v852_v56, %v1474_v51  ;;  %v837_v59 = vsel %vm836_vm14, %v835_v57, %v1473_v16 }
 0x364   :  { %v854_v60 = vpack.c.bf16 %v853_v58, %v837_v59 }
 0x366   :  { %1357 = vmatmul.mubr.msk.bf16.vlgmr.msra.gmra.mrb[12].mxu1 %vm898_vm15, %v854_v60 }
 0x367   :  { %1362 = vmatprep.mubr.msk.bf16.mxu1 %vm1543_vm13, %v1542_v8  ;;  %1361 = vmatpush3.bf16.msra.mxu1 %v967_v62 }
 0x368   :  { %1366 = vmatprep.subr.bf16.mxu1 %v1542_v8 }
 0x439   :  { %v940_v0 = vpop.f32.mrb[12].mxu1 }
 0x43a   :  { %v941_v1 = vadd.f32 %v1306_v63, %v940_v0  ;;  %v1358_v2 = vpop.f32.mrb[13].mxu1 }
 0x43b   :  { %v943_v3 = vpop.f32.mrb[14].mxu1 }
 0x43c   :  { %v949_v4 = vmul.f32 0.01, %v941_v1  ;;  %v944_v5 = vadd.f32 %v1306_v63, %v943_v3  ;;  %v1359_v6 = vpop.f32.mrb[15].mxu1  ;;  %vm947_vm2 = vcmp.ge.f32.partialorder %v941_v1, 0.0 }
 0x43e   :  { %vm948_vm4 = vcmp.ge.f32.partialorder %v944_v5, 0.0  ;;  %v950_v7 = vmul.f32 0.01, %v944_v5  ;;  %v951_v9 = vsel %vm947_vm2, %v941_v1, %v949_v4 }
 0x440   :  { %v952_v10 = vsel %vm948_vm4, %v944_v5, %v950_v7 }
 0x441   :  { %v953_v11 = vpack.c.bf16 %v952_v10, %v951_v9 }
 0x443   :  { %1363 = vmatmul.mubr.msk.bf16.vlgmr.msra.gmra.mrb[16].mxu1 %vm961_vm5, %v953_v11 }
 0x444   :  { %1368 = vmatprep.mubr.msk.bf16.mxu1 %vm1543_vm13, %v1542_v8 }
 0x516   :  { %v1003_v12 = vpop.f32.mrb[16].mxu1 }
 0x517   :  { %v1364_v20 = vpop.f32.mrb[17].mxu1  ;;  %v1012_v22 = vmul.f32 %v1010_v18, %v1003_v12 }
 0x518   :  { %v1006_v21 = vpop.f32.mrb[18].mxu1 }
 0x519   :  { %v1013_v23 = vmul.f32 %v1011_v19, %v1006_v21  ;;  %v1365_v24 = vpop.f32.mrb[19].mxu1 }
 0x51b   :  { %v1015_v25 = vpack.c.bf16 %v1013_v23, %v1012_v22 }
 0x51d   :  { %1367 = vmatpush3.bf16.msra.mxu1 %v1015_v25 }
 0x51e   :  { %1386 = vmatprep.subr.bf16.mxu1 %v1542_v8 }
 0x520   :  { %1369 = vmatmul.mubr.msk.bf16.vlgmr.msra.gmra.mrb[20].mxu1 %vm1016_vm6, %v1014_v26 }
 0x521   :  { %1390 = vmatprep.mubr.msk.bf16.mxu1 %vm1543_vm13, %v1542_v8  ;;  %1387 = vmatpush3.bf16.msra.mxu1 %v1511_v35 }
 0x522   :  { %1388 = vmatprep.subr.bf16.mxu1 %v1542_v8  ;;  %v1323_v8 = vld [vmem:[%s2029_s13] ss:$0 sm:$0xff] }
 0x525   :  { %1389 = vmatpush3.bf16.msra.mxu1 %v1184_v38 }
 0x5f3   :  { %v1054_v28 = vpop.f32.mrb[20].mxu1 }
 0x5f4   :  { %v1060_v29 = vpack.c.bf16 %v1054_v28, %v1054_v28  ;;  %v1370_v30 = vpop.f32.mrb[21].mxu1 }
 0x5f5   :  { %v1057_v31 = vpop.f32.mrb[22].mxu1 }
 0x5f6   :  { %1383 = vmatmul.mubr.msk.bf16.vlgmr.msra.gmra.mrb[20].mxu0 %vm118_vm0, %v1060_v29  ;;  %v1371_v32 = vpop.f32.mrb[23].mxu1 }
 0x6c9   :  { %v1145_v40 = vpop.f32.mrb[20].mxu0 }
 0x6ca   :  { %v1146_v41 = vadd.f32 %v1316_v39, %v1145_v40  ;;  %v1384_v42 = vpop.f32.mrb[21].mxu0 }
 0x6cb   :  { %v1148_v43 = vpop.f32.mrb[22].mxu0 }
 0x6cc   :  { %vm1151_vm0 = vcmp.ge.f32.partialorder %v1146_v41, 0.0  ;;  %v1152_v44 = vmul.f32 0.01, %v1146_v41  ;;  %v1385_v45 = vpop.f32.mrb[23].mxu0 }
 0x6ce   :  { %v1153_v46 = vsel %vm1151_vm0, %v1146_v41, %v1152_v44 }
 0x6cf   :  { %v1154_v47 = vpack.c.bf16 %v1153_v46, %v1153_v46 }
 0x6d1   :  { %1391 = vmatmul.mubr.msk.bf16.vlgmr.msra.gmra.mrb[24].mxu1 %vm1177_vm3, %v1154_v47 }
 0x7a4   :  { %v1220_v48 = vpop.f32.mrb[24].mxu1 }
 0x7a5   :  { %v1221_v49 = vadd.f32 %v1323_v8, %v1220_v48  ;;  %v1392_v50 = vpop.f32.mrb[25].mxu1 }
 0x7a6   :  { %v1223_v51 = vpop.f32.mrb[26].mxu1 }
 0x7a7   :  { %v1393_v16 = vpop.f32.mrb[27].mxu1  ;;  %1227 = vst.msk [vmem:[#allocation4] sm:$0x3] %vm1226_vm7, %v1221_v49 }
 0x7a8   :  { %1524 = shalt.err (!%p1521_p4)
}
 0x7a9   :  { %s1525_s13 = scalar_lea.hbm %s2030_s14, 32 }
 0x7aa   :  { %p1526_p5 = scmp.ne.s32.totalorder %s2030_s14, %s1525_s13  ;;  %p1529_p6 = scmp.lt.u32.totalorder %s1525_s13, %s2030_s14 }
 0x7ac   :  { %p1531_p7 = pnand %p1529_p6, %p1526_p5 }
 0x7ae   :  { %1534 = shalt.err (!%p1531_p7)
}
 0x7af   :  { %1237 = dma.vmem_to_hbm [thread:$0]  %s1235_s26, 32, %s2030_s14, [#allocation5]  }
 0x7b0   :  { %1535 = dma.done.wait [#allocation5], 32  }
 0x7b1   :  { %1536 = vsyncadd [#allocation5], 4294967264 }
 0x7b2   :  { %1241 = vsyncpa [#allocation5], 1 }

</bundles_post_ra>
